<compile_context>
chip_gen: v7x
topology: tpu7x:2x2x1
jax: 0.10.0
libtpu: 0.0.40
codegen_flags: <defaults>
</compile_context>

<pallas_src>
import functools

import jax
import jax.numpy as jnp
from jax.experimental import pallas as pl
from jax.experimental.pallas import tpu as pltpu


def _round_up(x, m):
    return (x + m - 1) // m * m


# ---------------------------------------------------------------------------
# Fused kernel: input linear + APPNP propagation + output MLP + softmax.
# ---------------------------------------------------------------------------
def _appnp_fused_kernel(p_ref, x_ref, w_in_t_ref, b_in_ref,
                        w1_t_ref, b1_ref, w2_t_ref, b2_ref,
                        y_ref, h_scr, *, alphas, gb, n):
    # (1) Input linear on the whole (gb*n, Din) block -> one large-M MXU matmul.
    H0 = jnp.dot(x_ref[...], w_in_t_ref[...],
                 preferred_element_type=jnp.float32) + b_in_ref[...]

    # (2) Per-graph personalized-PageRank propagation (gb and depth are static,
    #     so this unrolls fully; slices are static and sublane-aligned).
    for g in range(gb):
        H0_g = H0[g * n:(g + 1) * n, :]          # (n, Dh)
        P_g = p_ref[g]                           # (n, n)
        H_g = H0_g
        for a in alphas:
            PH = jnp.dot(P_g, H_g, preferred_element_type=jnp.float32)
            H_g = (1.0 - a) * PH + a * H0_g
        h_scr[g * n:(g + 1) * n, :] = H_g        # stays in VMEM, never hits HBM

    # (3) Output MLP + softmax on the flattened block (large-M matmuls again).
    Z = jnp.dot(h_scr[...], w1_t_ref[...],
                preferred_element_type=jnp.float32) + b1_ref[...]
    Z = jnp.maximum(Z, 0.0)                      # activation_function = ReLU
    L = jnp.dot(Z, w2_t_ref[...],
                preferred_element_type=jnp.float32) + b2_ref[...]
    m = jnp.max(L, axis=-1, keepdims=True)
    e = jnp.exp(L - m)                           # padded columns: exp(-huge) == 0
    y_ref[...] = e * pl.reciprocal(jnp.sum(e, axis=-1, keepdims=True), approx=True)


def _graphs_per_block(B, N, Din, Dh, Cpad, budget_bytes=8 << 20):
    """Largest divisor of B whose per-block VMEM footprint fits the budget."""
    # Double-buffered P / X inputs and Y output, plus single-buffered H scratch.
    per_graph = 2 * 4 * (N * N + N * Din + N * Cpad) + 4 * N * Dh
    gb = int(max(1, min(B, budget_bytes // max(per_graph, 1))))
    while B % gb:
        gb -= 1
    if (gb * N) % 8 != 0:
        gb = B   # full-array blocks waive the (8, 128) divisibility constraint
    return gb


def appnp_forward(P_tilde, X_tilde, params, alphas):
    """P_tilde: (B,N,N), X_tilde: (B,N,Din). Returns (B,N,Dout)."""
    B, N, _ = P_tilde.shape
    Din = X_tilde.shape[-1]
    w_in, b_in, w1, b1, w2, b2 = params
    Dh, Dho, Dout = w_in.shape[0], w1.shape[0], w2.shape[0]

    # Pre-transpose weights once in the wrapper (no in-kernel transposes).
    w_in_t = jnp.asarray(w_in.T, jnp.float32)                       # (Din, Dh)
    w1_t = jnp.asarray(w1.T, jnp.float32)                           # (Dh, Dho)
    # Pad the class axis to a lane-dense multiple of 128; padded logits get a
    # -1e30 bias so they contribute nothing to the softmax.
    Cpad = _round_up(Dout, 128)
    w2_t = jnp.zeros((Dho, Cpad), jnp.float32).at[:, :Dout].set(w2.T)
    b2_p = jnp.full((1, Cpad), -1e30, jnp.float32).at[:, :Dout].set(
        jnp.reshape(b2, (1, Dout)))
    b_in2 = jnp.reshape(b_in, (1, Dh)).astype(jnp.float32)
    b1_2 = jnp.reshape(b1, (1, Dho)).astype(jnp.float32)

    M = B * N
    X_flat = X_tilde.reshape(M, Din)

    gb = _graphs_per_block(B, N, Din, Dh, Cpad)
    kernel = functools.partial(
        _appnp_fused_kernel, alphas=tuple(float(a) for a in alphas), gb=gb, n=N)

    Y_pad = pl.pallas_call(
        kernel,
        out_shape=jax.ShapeDtypeStruct((M, Cpad), jnp.float32),
        grid=(B // gb,),
        in_specs=[
            pl.BlockSpec((gb, N, N), lambda b: (b, 0, 0)),      # P block
            pl.BlockSpec((gb * N, Din), lambda b: (b, 0)),      # X block (flattened)
            pl.BlockSpec((Din, Dh), lambda b: (0, 0)),          # W_in^T (resident)
            pl.BlockSpec((1, Dh), lambda b: (0, 0)),            # b_in
            pl.BlockSpec((Dh, Dho), lambda b: (0, 0)),          # W1^T (resident)
            pl.BlockSpec((1, Dho), lambda b: (0, 0)),           # b1
            pl.BlockSpec((Dho, Cpad), lambda b: (0, 0)),        # W2^T (class-padded)
            pl.BlockSpec((1, Cpad), lambda b: (0, 0)),          # b2 (class-padded)
        ],
        out_specs=pl.BlockSpec((gb * N, Cpad), lambda b: (b, 0)),  # lane-dense store
        scratch_shapes=[pltpu.VMEM((gb * N, Dh), jnp.float32)],    # H (never to HBM)
        compiler_params=pltpu.CompilerParams(
            dimension_semantics=("parallel",),
            vmem_limit_bytes=32 * 1024 * 1024,   # safe on v5e/v6e/v7x
        ),
    )(P_tilde, X_flat, w_in_t, b_in2, w1_t, b1_2, w2_t, b2_p)

    return Y_pad[:, :Dout].reshape(B, N, Dout)


def appnp_reference(P_tilde, X_tilde, params, alphas):
    """Pure-JAX reference for sanity checking."""
    w_in, b_in, w1, b1, w2, b2 = params
    H0 = jnp.einsum("bnd,hd->bnh", X_tilde, w_in) + b_in
    H = H0
    for a in alphas:
        H = (1.0 - a) * jnp.einsum("bnm,bmh->bnh", P_tilde, H) + a * H0
    Z = jnp.maximum(jnp.einsum("bnh,oh->bno", H, w1) + b1, 0.0)
    L = jnp.einsum("bno,co->bnc", Z, w2) + b2
    return jax.nn.softmax(L, axis=-1)


def make_params(key, input_size, input_hidden_size, output_hidden_size, output_size):
    ks = jax.random.split(key, 6)
    scale = 0.1
    w_in = scale * jax.random.normal(ks[0], (input_hidden_size, input_size), jnp.float32)
    b_in = scale * jax.random.normal(ks[1], (1, input_hidden_size), jnp.float32)
    w1 = scale * jax.random.normal(ks[2], (output_hidden_size, input_hidden_size), jnp.float32)
    b1 = scale * jax.random.normal(ks[3], (1, output_hidden_size), jnp.float32)
    w2 = scale * jax.random.normal(ks[4], (output_size, output_hidden_size), jnp.float32)
    b2 = scale * jax.random.normal(ks[5], (1, output_size), jnp.float32)
    return (w_in, b_in, w1, b1, w2, b2)


if __name__ == "__main__":
    # Small APPNP config
    B, N = 2, 16                 # batch of graphs, padded node count
    input_size = 32
    input_hidden_size = 16       # input_layer = Linear(32 -> 16)
    output_hidden_size = 8
    output_size = 4
    depth = 3
    alphas = [0.1, 0.2, 0.3]

    key = jax.random.PRNGKey(0)
    kp, kx, kw = jax.random.split(key, 3)

    # Padded propagation matrices (row-normalized random adjacency) and node features.
    A = jax.random.uniform(kp, (B, N, N), jnp.float32)
    P_tilde = A / jnp.sum(A, axis=-1, keepdims=True)
    X_tilde = jax.random.normal(kx, (B, N, input_size), jnp.float32)

    params = make_params(kw, input_size, input_hidden_size,
                         output_hidden_size, output_size)

    y = appnp_forward(P_tilde, X_tilde, params, alphas)
    jax.block_until_ready(y)

    y_ref = appnp_reference(P_tilde, X_tilde, params, alphas)
    assert y.shape == (B, N, output_size)
    # Tolerances account for the approximate (EUP) reciprocal in the softmax.
    assert jnp.allclose(jnp.sum(y, axis=-1), 1.0, atol=5e-3)
    assert jnp.allclose(y, y_ref, atol=2e-3, rtol=2e-3)

    print("KERNEL_OK")
</pallas_src>

<mosaic_0001>
module attributes {stable_mosaic.version = 11 : i64} {
  func.func @_appnp_fused_kernel(%arg0: i32, %arg1: memref<2x16x16xf32, #tpu.memory_space<vmem>>, %arg2: memref<32x32xf32, #tpu.memory_space<vmem>>, %arg3: memref<32x16xf32, #tpu.memory_space<vmem>>, %arg4: memref<1x16xf32, #tpu.memory_space<vmem>>, %arg5: memref<16x8xf32, #tpu.memory_space<vmem>>, %arg6: memref<1x8xf32, #tpu.memory_space<vmem>>, %arg7: memref<8x128xf32, #tpu.memory_space<vmem>>, %arg8: memref<1x128xf32, #tpu.memory_space<vmem>>, %arg9: memref<32x128xf32, #tpu.memory_space<vmem>>, %arg10: memref<32x16xf32, #tpu.memory_space<vmem>>) attributes {dimension_semantics = [#tpu.dimension_semantics<parallel>], iteration_bounds = array<i64: 1>, scalar_prefetch = 0 : i64, scratch_operands = 1 : i64, tpu.core_type = #tpu.core_type<tc>, window_params = [{transform_indices = @transform_0, window_bounds = array<i64: 2, 16, 16>}, {transform_indices = @transform_1, window_bounds = array<i64: 32, 32>}, {pipeline_mode = #tpu.pipeline_mode<synchronous>, transform_indices = @transform_2, window_bounds = array<i64: 32, 16>}, {pipeline_mode = #tpu.pipeline_mode<synchronous>, transform_indices = @transform_3, window_bounds = array<i64: 1, 16>}, {pipeline_mode = #tpu.pipeline_mode<synchronous>, transform_indices = @transform_4, window_bounds = array<i64: 16, 8>}, {pipeline_mode = #tpu.pipeline_mode<synchronous>, transform_indices = @transform_5, window_bounds = array<i64: 1, 8>}, {pipeline_mode = #tpu.pipeline_mode<synchronous>, transform_indices = @transform_6, window_bounds = array<i64: 8, 128>}, {pipeline_mode = #tpu.pipeline_mode<synchronous>, transform_indices = @transform_7, window_bounds = array<i64: 1, 128>}, {transform_indices = @transform_8, window_bounds = array<i64: 32, 128>}]} {
    %c0 = arith.constant 0 : index
    %c0_0 = arith.constant 0 : index
    %0 = vector.load %arg2[%c0, %c0_0] : memref<32x32xf32, #tpu.memory_space<vmem>>, vector<32x32xf32>
    %c0_1 = arith.constant 0 : index
    %c0_2 = arith.constant 0 : index
    %1 = vector.load %arg3[%c0_1, %c0_2] : memref<32x16xf32, #tpu.memory_space<vmem>>, vector<32x16xf32>
    %cst = arith.constant dense<0.000000e+00> : vector<32x16xf32>
    %2 = tpu.matmul %0, %1, %cst {dimension_numbers = #tpu.dot_dimension_numbers<[1], [0], [0], [1], [0, 0, 1, 1], [], []>} : vector<32x32xf32>, vector<32x16xf32>, vector<32x16xf32> -> vector<32x16xf32>
    %c0_3 = arith.constant 0 : index
    %c0_4 = arith.constant 0 : index
    %3 = vector.load %arg4[%c0_3, %c0_4] : memref<1x16xf32, #tpu.memory_space<vmem>>, vector<1x16xf32>
    %4 = vector.broadcast %3 : vector<1x16xf32> to vector<32x16xf32>
    %5 = arith.addf %2, %4 : vector<32x16xf32>
    %6 = vector.extract_strided_slice %5 {offsets = [0, 0], sizes = [16, 16], strides = [1, 1]} : vector<32x16xf32> to vector<16x16xf32>
    %c0_5 = arith.constant 0 : index
    %c0_6 = arith.constant 0 : index
    %c0_7 = arith.constant 0 : index
    %7 = vector.load %arg1[%c0_5, %c0_6, %c0_7] : memref<2x16x16xf32, #tpu.memory_space<vmem>>, vector<1x16x16xf32>
    %8 = vector.shape_cast %7 : vector<1x16x16xf32> to vector<16x16xf32>
    %cst_8 = arith.constant dense<0.000000e+00> : vector<16x16xf32>
    %9 = tpu.matmul %8, %6, %cst_8 {dimension_numbers = #tpu.dot_dimension_numbers<[1], [0], [0], [1], [0, 0, 1, 1], [], []>} : vector<16x16xf32>, vector<16x16xf32>, vector<16x16xf32> -> vector<16x16xf32>
    %cst_9 = arith.constant 0.899999976 : f32
    %10 = vector.broadcast %cst_9 : f32 to vector<16x16xf32>
    %11 = arith.mulf %10, %9 : vector<16x16xf32>
    %cst_10 = arith.constant 1.000000e-01 : f32
    %12 = vector.broadcast %cst_10 : f32 to vector<16x16xf32>
    %13 = arith.mulf %12, %6 : vector<16x16xf32>
    %14 = arith.addf %11, %13 : vector<16x16xf32>
    %cst_11 = arith.constant dense<0.000000e+00> : vector<16x16xf32>
    %15 = tpu.matmul %8, %14, %cst_11 {dimension_numbers = #tpu.dot_dimension_numbers<[1], [0], [0], [1], [0, 0, 1, 1], [], []>} : vector<16x16xf32>, vector<16x16xf32>, vector<16x16xf32> -> vector<16x16xf32>
    %cst_12 = arith.constant 8.000000e-01 : f32
    %16 = vector.broadcast %cst_12 : f32 to vector<16x16xf32>
    %17 = arith.mulf %16, %15 : vector<16x16xf32>
    %cst_13 = arith.constant 2.000000e-01 : f32
    %18 = vector.broadcast %cst_13 : f32 to vector<16x16xf32>
    %19 = arith.mulf %18, %6 : vector<16x16xf32>
    %20 = arith.addf %17, %19 : vector<16x16xf32>
    %cst_14 = arith.constant dense<0.000000e+00> : vector<16x16xf32>
    %21 = tpu.matmul %8, %20, %cst_14 {dimension_numbers = #tpu.dot_dimension_numbers<[1], [0], [0], [1], [0, 0, 1, 1], [], []>} : vector<16x16xf32>, vector<16x16xf32>, vector<16x16xf32> -> vector<16x16xf32>
    %cst_15 = arith.constant 0.699999988 : f32
    %22 = vector.broadcast %cst_15 : f32 to vector<16x16xf32>
    %23 = arith.mulf %22, %21 : vector<16x16xf32>
    %cst_16 = arith.constant 3.000000e-01 : f32
    %24 = vector.broadcast %cst_16 : f32 to vector<16x16xf32>
    %25 = arith.mulf %24, %6 : vector<16x16xf32>
    %26 = arith.addf %23, %25 : vector<16x16xf32>
    %c0_17 = arith.constant 0 : index
    %c0_18 = arith.constant 0 : index
    %27 = vector.load %arg10[%c0_17, %c0_18] : memref<32x16xf32, #tpu.memory_space<vmem>>, vector<16x16xf32>
    tpu.vector_store %arg10[%c0_17, %c0_18], %26 {strides = array<i32>} : memref<32x16xf32, #tpu.memory_space<vmem>>, vector<16x16xf32>,
    %28 = vector.extract_strided_slice %5 {offsets = [16, 0], sizes = [16, 16], strides = [1, 1]} : vector<32x16xf32> to vector<16x16xf32>
    %c1 = arith.constant 1 : index
    %c0_19 = arith.constant 0 : index
    %c0_20 = arith.constant 0 : index
    %29 = vector.load %arg1[%c1, %c0_19, %c0_20] : memref<2x16x16xf32, #tpu.memory_space<vmem>>, vector<1x16x16xf32>
    %30 = vector.shape_cast %29 : vector<1x16x16xf32> to vector<16x16xf32>
    %cst_21 = arith.constant dense<0.000000e+00> : vector<16x16xf32>
    %31 = tpu.matmul %30, %28, %cst_21 {dimension_numbers = #tpu.dot_dimension_numbers<[1], [0], [0], [1], [0, 0, 1, 1], [], []>} : vector<16x16xf32>, vector<16x16xf32>, vector<16x16xf32> -> vector<16x16xf32>
    %cst_22 = arith.constant 0.899999976 : f32
    %32 = vector.broadcast %cst_22 : f32 to vector<16x16xf32>
    %33 = arith.mulf %32, %31 : vector<16x16xf32>
    %cst_23 = arith.constant 1.000000e-01 : f32
    %34 = vector.broadcast %cst_23 : f32 to vector<16x16xf32>
    %35 = arith.mulf %34, %28 : vector<16x16xf32>
    %36 = arith.addf %33, %35 : vector<16x16xf32>
    %cst_24 = arith.constant dense<0.000000e+00> : vector<16x16xf32>
    %37 = tpu.matmul %30, %36, %cst_24 {dimension_numbers = #tpu.dot_dimension_numbers<[1], [0], [0], [1], [0, 0, 1, 1], [], []>} : vector<16x16xf32>, vector<16x16xf32>, vector<16x16xf32> -> vector<16x16xf32>
    %cst_25 = arith.constant 8.000000e-01 : f32
    %38 = vector.broadcast %cst_25 : f32 to vector<16x16xf32>
    %39 = arith.mulf %38, %37 : vector<16x16xf32>
    %cst_26 = arith.constant 2.000000e-01 : f32
    %40 = vector.broadcast %cst_26 : f32 to vector<16x16xf32>
    %41 = arith.mulf %40, %28 : vector<16x16xf32>
    %42 = arith.addf %39, %41 : vector<16x16xf32>
    %cst_27 = arith.constant dense<0.000000e+00> : vector<16x16xf32>
    %43 = tpu.matmul %30, %42, %cst_27 {dimension_numbers = #tpu.dot_dimension_numbers<[1], [0], [0], [1], [0, 0, 1, 1], [], []>} : vector<16x16xf32>, vector<16x16xf32>, vector<16x16xf32> -> vector<16x16xf32>
    %cst_28 = arith.constant 0.699999988 : f32
    %44 = vector.broadcast %cst_28 : f32 to vector<16x16xf32>
    %45 = arith.mulf %44, %43 : vector<16x16xf32>
    %cst_29 = arith.constant 3.000000e-01 : f32
    %46 = vector.broadcast %cst_29 : f32 to vector<16x16xf32>
    %47 = arith.mulf %46, %28 : vector<16x16xf32>
    %48 = arith.addf %45, %47 : vector<16x16xf32>
    %c16 = arith.constant 16 : index
    %c0_30 = arith.constant 0 : index
    %49 = vector.load %arg10[%c16, %c0_30] : memref<32x16xf32, #tpu.memory_space<vmem>>, vector<16x16xf32>
    tpu.vector_store %arg10[%c16, %c0_30], %48 {strides = array<i32>} : memref<32x16xf32, #tpu.memory_space<vmem>>, vector<16x16xf32>,
    %c0_31 = arith.constant 0 : index
    %c0_32 = arith.constant 0 : index
    %50 = vector.load %arg10[%c0_31, %c0_32] : memref<32x16xf32, #tpu.memory_space<vmem>>, vector<32x16xf32>
    %c0_33 = arith.constant 0 : index
    %c0_34 = arith.constant 0 : index
    %51 = vector.load %arg5[%c0_33, %c0_34] : memref<16x8xf32, #tpu.memory_space<vmem>>, vector<16x8xf32>
    %cst_35 = arith.constant dense<0.000000e+00> : vector<32x8xf32>
    %52 = tpu.matmul %50, %51, %cst_35 {dimension_numbers = #tpu.dot_dimension_numbers<[1], [0], [0], [1], [0, 0, 1, 1], [], []>} : vector<32x16xf32>, vector<16x8xf32>, vector<32x8xf32> -> vector<32x8xf32>
    %c0_36 = arith.constant 0 : index
    %c0_37 = arith.constant 0 : index
    %53 = vector.load %arg6[%c0_36, %c0_37] : memref<1x8xf32, #tpu.memory_space<vmem>>, vector<1x8xf32>
    %54 = vector.broadcast %53 : vector<1x8xf32> to vector<32x8xf32>
    %55 = arith.addf %52, %54 : vector<32x8xf32>
    %cst_38 = arith.constant 0.000000e+00 : f32
    %56 = vector.broadcast %cst_38 : f32 to vector<32x8xf32>
    %57 = arith.maximumf %55, %56 : vector<32x8xf32>
    %c0_39 = arith.constant 0 : index
    %c0_40 = arith.constant 0 : index
    %58 = vector.load %arg7[%c0_39, %c0_40] : memref<8x128xf32, #tpu.memory_space<vmem>>, vector<8x128xf32>
    %cst_41 = arith.constant dense<0.000000e+00> : vector<32x128xf32>
    %59 = tpu.matmul %57, %58, %cst_41 {dimension_numbers = #tpu.dot_dimension_numbers<[1], [0], [0], [1], [0, 0, 1, 1], [], []>} : vector<32x8xf32>, vector<8x128xf32>, vector<32x128xf32> -> vector<32x128xf32>
    %c0_42 = arith.constant 0 : index
    %c0_43 = arith.constant 0 : index
    %60 = vector.load %arg8[%c0_42, %c0_43] : memref<1x128xf32, #tpu.memory_space<vmem>>, vector<1x128xf32>
    %61 = vector.broadcast %60 : vector<1x128xf32> to vector<32x128xf32>
    %62 = arith.addf %59, %61 : vector<32x128xf32>
    %cst_44 = arith.constant dense<0xFF800000> : vector<32xf32>
    %63 = vector.multi_reduction <maximumf>, %62, %cst_44 [1] : vector<32x128xf32> to vector<32xf32>
    %64 = vector.shape_cast %63 : vector<32xf32> to vector<32x1xf32>
    %65 = vector.broadcast %64 : vector<32x1xf32> to vector<32x128xf32>
    %66 = arith.subf %62, %65 : vector<32x128xf32>
    %67 = math.exp %66 : vector<32x128xf32>
    %cst_45 = arith.constant dense<0.000000e+00> : vector<32xf32>
    %68 = vector.multi_reduction <add>, %67, %cst_45 [1] : vector<32x128xf32> to vector<32xf32>
    %69 = vector.shape_cast %68 : vector<32xf32> to vector<32x1xf32>
    %70 = tpu.reciprocal %69 {approx = true} : vector<32x1xf32> -> vector<32x1xf32>
    %71 = vector.broadcast %70 : vector<32x1xf32> to vector<32x128xf32>
    %72 = arith.mulf %67, %71 : vector<32x128xf32>
    %c0_46 = arith.constant 0 : index
    %c0_47 = arith.constant 0 : index
    %73 = vector.load %arg9[%c0_46, %c0_47] : memref<32x128xf32, #tpu.memory_space<vmem>>, vector<32x128xf32>
    tpu.vector_store %arg9[%c0_46, %c0_47], %72 {strides = array<i32>} : memref<32x128xf32, #tpu.memory_space<vmem>>, vector<32x128xf32>,
    return
  }
  func.func @transform_0(%arg0: i32) -> (i32, i32, i32) {
    %c0_i32 = arith.constant 0 : i32
    %c0_i32_0 = arith.constant 0 : i32
    %c0_i32_1 = arith.constant 0 : i32
    return %arg0, %c0_i32, %c0_i32_0 : i32, i32, i32
  }
  func.func @transform_1(%arg0: i32) -> (i32, i32) {
    %c0_i32 = arith.constant 0 : i32
    %c0_i32_0 = arith.constant 0 : i32
    return %arg0, %c0_i32 : i32, i32
  }
  func.func @transform_2(%arg0: i32) -> (i32, i32) {
    %c0_i32 = arith.constant 0 : i32
    %c0_i32_0 = arith.constant 0 : i32
    %c0_i32_1 = arith.constant 0 : i32
    return %c0_i32, %c0_i32_0 : i32, i32
  }
  func.func @transform_3(%arg0: i32) -> (i32, i32) {
    %c0_i32 = arith.constant 0 : i32
    %c0_i32_0 = arith.constant 0 : i32
    %c0_i32_1 = arith.constant 0 : i32
    return %c0_i32, %c0_i32_0 : i32, i32
  }
  func.func @transform_4(%arg0: i32) -> (i32, i32) {
    %c0_i32 = arith.constant 0 : i32
    %c0_i32_0 = arith.constant 0 : i32
    %c0_i32_1 = arith.constant 0 : i32
    return %c0_i32, %c0_i32_0 : i32, i32
  }
  func.func @transform_5(%arg0: i32) -> (i32, i32) {
    %c0_i32 = arith.constant 0 : i32
    %c0_i32_0 = arith.constant 0 : i32
    %c0_i32_1 = arith.constant 0 : i32
    return %c0_i32, %c0_i32_0 : i32, i32
  }
  func.func @transform_6(%arg0: i32) -> (i32, i32) {
    %c0_i32 = arith.constant 0 : i32
    %c0_i32_0 = arith.constant 0 : i32
    %c0_i32_1 = arith.constant 0 : i32
    return %c0_i32, %c0_i32_0 : i32, i32
  }
  func.func @transform_7(%arg0: i32) -> (i32, i32) {
    %c0_i32 = arith.constant 0 : i32
    %c0_i32_0 = arith.constant 0 : i32
    %c0_i32_1 = arith.constant 0 : i32
    return %c0_i32, %c0_i32_0 : i32, i32
  }
  func.func @transform_8(%arg0: i32) -> (i32, i32) {
    %c0_i32 = arith.constant 0 : i32
    %c0_i32_0 = arith.constant 0 : i32
    return %arg0, %c0_i32 : i32, i32
  }
}

</mosaic_0001>

<bundles_post_ra>
// kernel: tpu_custom_call.1
= control target key start
LH: loop header
LB: loop body
LE: loop exit
PB: predicated region body
PF: predicated region fallthrough
CT: control target
= control target key end

     0   :  { %vm45_vm0 = vcmask 261120   ;;  %s1323_s0 = inlined_call_operand.vmem [shape: f32[2,16,16], index: 0, kind: input, shape index: {}]   ;;  %s1324_s1 = inlined_call_operand.vmem [shape: f32[32,32], index: 1, kind: input, shape index: {}]   ;;  %s1325_s2 = inlined_call_operand.vmem [shape: f32[32,16], index: 2, kind: input, shape index: {}]   ;;  %s1326_s3 = inlined_call_operand.vmem [shape: f32[1,16], index: 3, kind: input, shape index: {}]   ;;  %s1327_s4 = inlined_call_operand.vmem [shape: f32[16,8], index: 4, kind: input, shape index: {}]   ;;  %s1328_s5 = inlined_call_operand.vmem [shape: f32[1,8], index: 5, kind: input, shape index: {}]   ;;  %s1329_s6 = inlined_call_operand.vmem [shape: f32[8,128], index: 6, kind: input, shape index: {}]   ;;  %s1330_s7 = inlined_call_operand.vmem [shape: f32[1,128], index: 7, kind: input, shape index: {}]   ;;  %s1331_s8 = inlined_call_operand.hbm [shape: f32[32,128], index: 8, kind: output, shape index: {}]  }
   0x1   :  { %v34_v0 = vld [vmem:[%s1325_s2] sm:$0xff]  ;;  %v35_v1 = vld [vmem:[%s1325_s2 + $0x8] sm:$0xff]  ;;  %v36_v2 = vld [vmem:[%s1325_s2 + $0x10] sm:$0xff] }
   0x2   :  { %v1073_v3 = vpack.c.bf16 %v35_v1, %v34_v0  ;;  %v37_v4 = vld [vmem:[%s1325_s2 + $0x18] sm:$0xff]  ;;  %v30_v5 = vld [vmem:[%s1324_s1] sm:$0xff] }
   0x3   :  { %v1077_v6 = vpack.c.bf16 %v37_v4, %v36_v2  ;;  %1007 = vmatprep.mubr.msk.f32.mxu0 %vm45_vm0, %v30_v5 }
   0x4   :  { %13 = vsyncpa [#allocation4], 0  ;;  %1074 = vmatprep.subr.bf16.mxu0 %v1073_v3  ;;  %v31_v7 = vld [vmem:[%s1324_s1 + $0x8] sm:$0xff]  ;;  %v32_v8 = vld [vmem:[%s1324_s1 + $0x10] sm:$0xff]  ;;  %vm145_vm1 = vcmask 130048   ;;  %vm773_vm2 = vcmask 64512  }
   0x5   :  { %1076 = vmatpush3.bf16.msra.mxu0 %v1073_v3  ;;  %v33_v9 = vld [vmem:[%s1324_s1 + $0x18] sm:$0xff]  ;;  %v143_v10 = vld [vmem:[%s1323_s0] sm:$0xff]  ;;  %v938_v11 = vld [vmem:[%s1323_s0 + $0x10] sm:$0xff] }
   0x6   :  { %1078 = vmatprep.subr.bf16.mxu0 %v1077_v6  ;;  %1017 = vmatprep.mubr.msk.f32.mxu1 %vm145_vm1, %v143_v10  ;;  %v927_v12 = vld [vmem:[%s1326_s3] ss:$0 sm:$0xff]  ;;  %v144_v22 = vld [vmem:[%s1323_s0 + $0x8] sm:$0xff]  ;;  %v1258_v24 = vld [vmem:[%s1323_s0 + $0x18] sm:$0xff] }
   0x7   :  { %v655_v52 = vld [vmem:[%s1327_s4] sm:$0xff]  ;;  %v656_v53 = vld [vmem:[%s1327_s4 + $0x8] sm:$0xff] }
   0x8   :  { %v1105_v54 = vpack.c.bf16 %v656_v53, %v655_v52 }
   0x9   :  { %1080 = vmatpush3.bf16.msra.mxu0 %v1077_v6 }
   0xc   :  { %1008 = vmatmul.mubr.msk.f32.vlgmr.msra.gmra.mrb[0].mxu0 %vm45_vm0, %v31_v7 }
   0xd   :  { %1010 = vmatprep.mubr.msk.f32.mxu0 %vm45_vm0, %v32_v8 }
  0x10   :  { %1011 = vmatmul.mubr.msk.f32.gmra.mrb[2].mxu0 %vm45_vm0, %v33_v9 }
  0x11   :  { %1038 = vmatprep.mubr.msk.f32.mxu0 %vm145_vm1, %v938_v11 }
  0xdf   :  { %v1009_v13 = vpop.f32.mrb[0].mxu0 }
  0xe0   :  { %v1239_v14 = vadd.f32 %v1009_v13, %v927_v12  ;;  %v124_v15 = vpop.f32.mrb[1].mxu0 }
  0xe1   :  { %v1241_v16 = vadd.f32 %v927_v12, %v124_v15 }
  0xe2   :  { %v230_v27 = vmul.f32 0.1, %v1239_v14  ;;  %v311_v45 = vmul.f32 0.2, %v1239_v14  ;;  %v392_v57 = vmul.f32 0.3, %v1239_v14 }
  0xe3   :  { %v1012_v17 = vpop.f32.mrb[2].mxu0  ;;  %v1081_v18 = vpack.c.bf16 %v1239_v14, %v1241_v16  ;;  %v229_v30 = vmul.f32 0.1, %v1241_v16  ;;  %v310_v48 = vmul.f32 0.2, %v1241_v16 }
  0xe4   :  { %v1245_v19 = vadd.f32 %v1012_v17, %v927_v12  ;;  %v134_v20 = vpop.f32.mrb[3].mxu0  ;;  %v391_v60 = vmul.f32 0.3, %v1241_v16 }
  0xe5   :  { %v1247_v21 = vadd.f32 %v927_v12, %v134_v20  ;;  %1082 = vmatprep.subr.bf16.mxu1 %v1081_v18 }
  0xe6   :  { %1084 = vmatpush3.bf16.msra.mxu1 %v1081_v18  ;;  %v484_v32 = vmul.f32 0.1, %v1245_v19  ;;  %v565_v1 = vmul.f32 0.2, %v1245_v19  ;;  %v646_v17 = vmul.f32 0.3, %v1245_v19 }
  0xe7   :  { %v1093_v23 = vpack.c.bf16 %v1245_v19, %v1247_v21  ;;  %v483_v35 = vmul.f32 0.1, %v1247_v21  ;;  %v564_v4 = vmul.f32 0.2, %v1247_v21 }
  0xe9   :  { %1018 = vmatmul.mubr.msk.f32.vlgmr.msra.gmra.mrb[0].mxu1 %vm145_vm1, %v144_v22  ;;  %1094 = vmatprep.subr.bf16.mxu0 %v1093_v23 }
  0xea   :  { %1096 = vmatpush3.bf16.msra.mxu0 %v1093_v23  ;;  %1024 = vmatprep.mubr.msk.f32.mxu1 %vm145_vm1, %v143_v10  ;;  %v645_v23 = vmul.f32 0.3, %v1247_v21  ;;  %v951_v21 = vld [vmem:[%s1330_s7] ss:$0 sm:$0xff]  ;;  %s1152_s7 = smov [#allocation3]  }
  0xeb   :  { %s916_s12 = sshll.u32 %s1152_s7, 4  ;;  %s917_s12 = int_to_ptr.vmem [resolvable:$true] %s916_s12 }
  0xec   :  { %s1128_s13 = scalar_lea.vmem %s917_s12, 512  ;;  %p1133_p1 = scmp.lt.s32.totalorder %s917_s12, %s917_s12 }
  0xed   :  { %1039 = vmatmul.mubr.msk.f32.vlgmr.msra.gmra.mrb[4].mxu0 %vm145_vm1, %v1258_v24  ;;  %p1129_p0 = scmp.ne.s32.totalorder %s917_s12, %s1128_s13  ;;  %p1134_p2 = scmp.lt.s32.totalorder %s1128_s13, %s1128_s13 }
  0xee   :  { %1052 = vmatprep.mubr.msk.f32.mxu0 %vm145_vm1, %v938_v11 }
  0xef   :  { %p1135_p3 = por %p1134_p2, %p1133_p1 }
  0xf1   :  { %p1136_p4 = pnand %p1135_p3, %p1129_p0 }
 0x1bc   :  { %v1019_v25 = vpop.f32.mrb[0].mxu1 }
 0x1bd   :  { %v228_v26 = vmul.f32 0.9, %v1019_v25  ;;  %v218_v28 = vpop.f32.mrb[1].mxu1 }
 0x1be   :  { %v227_v29 = vmul.f32 0.9, %v218_v28 }
 0x1bf   :  { %v232_v31 = vadd.f32 %v230_v27, %v228_v26 }
 0x1c0   :  { %v231_v33 = vadd.f32 %v229_v30, %v227_v29  ;;  %v1040_v34 = vpop.f32.mrb[4].mxu0 }
 0x1c1   :  { %v482_v36 = vmul.f32 0.9, %v1040_v34  ;;  %v472_v37 = vpop.f32.mrb[5].mxu0 }
 0x1c2   :  { %v481_v38 = vmul.f32 0.9, %v472_v37  ;;  %v1085_v39 = vpack.c.bf16 %v232_v31, %v231_v33 }
 0x1c3   :  { %v486_v40 = vadd.f32 %v484_v32, %v482_v36 }
 0x1c4   :  { %v485_v41 = vadd.f32 %v483_v35, %v481_v38  ;;  %1086 = vmatprep.subr.bf16.mxu1 %v1085_v39 }
 0x1c5   :  { %1088 = vmatpush3.bf16.msra.mxu1 %v1085_v39 }
 0x1c6   :  { %v1097_v42 = vpack.c.bf16 %v486_v40, %v485_v41 }
 0x1c8   :  { %1025 = vmatmul.mubr.msk.f32.vlgmr.msra.gmra.mrb[2].mxu1 %vm145_vm1, %v144_v22 }
 0x1c9   :  { %1031 = vmatprep.mubr.msk.f32.mxu1 %vm145_vm1, %v143_v10  ;;  %v765_v10 = vld [vmem:[%s1329_s6] sm:$0xff] }
 0x29b   :  { %v1026_v43 = vpop.f32.mrb[2].mxu1 }
 0x29c   :  { %v309_v44 = vmul.f32 0.8, %v1026_v43  ;;  %v299_v46 = vpop.f32.mrb[3].mxu1 }
 0x29d   :  { %v308_v47 = vmul.f32 0.8, %v299_v46 }
 0x29e   :  { %v313_v49 = vadd.f32 %v311_v45, %v309_v44 }
 0x29f   :  { %v312_v50 = vadd.f32 %v310_v48, %v308_v47 }
 0x2a1   :  { %v1089_v51 = vpack.c.bf16 %v313_v49, %v312_v50 }
 0x2a3   :  { %1090 = vmatprep.subr.bf16.mxu1 %v1089_v51 }
 0x2a4   :  { %1092 = vmatpush3.bf16.msra.mxu1 %v1089_v51 }
 0x2a5   :  { %1098 = vmatprep.subr.bf16.mxu1 %v1097_v42 }
 0x2a7   :  { %1032 = vmatmul.mubr.msk.f32.vlgmr.msra.gmra.mrb[4].mxu1 %vm145_vm1, %v144_v22 }
 0x2a8   :  { %1100 = vmatpush3.bf16.msra.mxu1 %v1097_v42  ;;  %1045 = vmatprep.mubr.msk.f32.mxu1 %vm145_vm1, %v938_v11  ;;  %v946_v11 = vld [vmem:[%s1328_s5] ss:$0 sm:$0xff] }
 0x2a9   :  { %1106 = vmatprep.subr.bf16.mxu1 %v1105_v54 }
 0x2ab   :  { %1046 = vmatmul.mubr.msk.f32.vlgmr.msra.gmra.mrb[6].mxu1 %vm145_vm1, %v1258_v24 }
 0x2ac   :  { %1108 = vmatpush3.bf16.msra.mxu1 %v1105_v54 }
 0x37a   :  { %v1033_v55 = vpop.f32.mrb[4].mxu1 }
 0x37b   :  { %v390_v56 = vmul.f32 0.7, %v1033_v55  ;;  %v380_v58 = vpop.f32.mrb[5].mxu1 }
 0x37c   :  { %v389_v59 = vmul.f32 0.7, %v380_v58 }
 0x37d   :  { %v394_v61 = vadd.f32 %v392_v57, %v390_v56 }
 0x37e   :  { %v393_v62 = vadd.f32 %v391_v60, %v389_v59  ;;  %v1047_v63 = vpop.f32.mrb[6].mxu1 }
 0x37f   :  { %396 = vst.msk [vmem:[#allocation2 + $0x8] sm:$0xff] %vm145_vm1, %v394_v61  ;;  %v563_v0 = vmul.f32 0.8, %v1047_v63  ;;  %v553_v2 = vpop.f32.mrb[7].mxu1 }
 0x380   :  { %395 = vst.msk [vmem:[#allocation2] sm:$0xff] %vm145_vm1, %v393_v62  ;;  %v562_v3 = vmul.f32 0.8, %v553_v2 }
 0x381   :  { %v567_v5 = vadd.f32 %v565_v1, %v563_v0 }
 0x382   :  { %v566_v6 = vadd.f32 %v564_v4, %v562_v3 }
 0x384   :  { %v1101_v7 = vpack.c.bf16 %v567_v5, %v566_v6 }
 0x386   :  { %1102 = vmatprep.subr.bf16.mxu0 %v1101_v7  ;;  %v652_v9 = vld [vmem:[#allocation2 + $0x8] sm:$0xff] }
 0x387   :  { %1104 = vmatpush3.bf16.msra.mxu0 %v1101_v7  ;;  %v651_v8 = vld [vmem:[#allocation2] sm:$0xff] }
 0x388   :  { %1059 = vmatprep.mubr.msk.f32.mxu1 %vm145_vm1, %v651_v8  ;;  %1065 = vmatprep.subr.mxu0 %v765_v10 }
 0x389   :  { %1060 = vmatmul.mubr.msk.f32.vlgmr.msra.gmra.mrb[8].mxu1 %vm145_vm1, %v652_v9 }
 0x38a   :  { %1053 = vmatmul.mubr.msk.f32.vlgmr.msra.gmra.mrb[6].mxu0 %vm145_vm1, %v1258_v24 }
 0x38b   :  { %1066 = vmatpush3.msra.mxu0 %v765_v10 }
 0x45c   :  { %v1061_v12 = vpop.f32.mrb[8].mxu1 }
 0x45d   :  { %v748_v13 = vadd.f32 %v1061_v12, %v946_v11  ;;  %v1054_v14 = vpop.f32.mrb[6].mxu0  ;;  %v742_v15 = vpop.f32.mrb[9].mxu1 }
 0x45e   :  { %v644_v16 = vmul.f32 0.7, %v1054_v14  ;;  %v743_v18 = vadd.f32 %v946_v11, %v742_v15  ;;  %v634_v20 = vpop.f32.mrb[7].mxu0 }
 0x45f   :  { %v643_v22 = vmul.f32 0.7, %v634_v20  ;;  %v762_v26 = vmax.f32 %v748_v13, 0.0 }
 0x460   :  { %v648_v24 = vadd.f32 %v646_v17, %v644_v16  ;;  %v761_v25 = vmax.f32 %v743_v18, 0.0 }
 0x461   :  { %v647_v27 = vadd.f32 %v645_v23, %v643_v22 }
 0x462   :  { %650 = vst.msk [vmem:[#allocation2 + $0x18] sm:$0xff] %vm145_vm1, %v648_v24  ;;  %1067 = vmatprep.mubr.msk.f32.mxu0 %vm773_vm2, %v761_v25 }
 0x463   :  { %649 = vst.msk [vmem:[#allocation2 + $0x10] sm:$0xff] %vm145_vm1, %v647_v27  ;;  %1068 = vmatmul.mubr.msk.f32.vlgmr.msra.gmra.mrb[8].mxu0 %vm773_vm2, %v762_v26 }
 0x469   :  { %v654_v19 = vld [vmem:[#allocation2 + $0x18] sm:$0xff] }
 0x46a   :  { %v653_v28 = vld [vmem:[#allocation2 + $0x10] sm:$0xff] }
 0x46b   :  { %1062 = vmatprep.mubr.msk.f32.mxu1 %vm145_vm1, %v653_v28 }
 0x46c   :  { %1063 = vmatmul.mubr.msk.f32.gmra.mrb[10].mxu1 %vm145_vm1, %v654_v19 }
 0x536   :  { %v1069_v29 = vpop.f32.mrb[8].mxu0 }
 0x537   :  { %v852_v30 = vpop.f32.mrb[9].mxu0  ;;  %v858_v32 = vadd.f32 %v1069_v29, %v951_v21 }
 0x538   :  { %v853_v31 = vadd.f32 %v951_v21, %v852_v30 }
 0x53a   :  { %871 = vmax.xlane.f32.xlu0 %v853_v31 }
 0x53e   :  { %873 = vmax.xlane.f32.xlu0 %v858_v32 }
 0x53f   :  { %v1064_v33 = vpop.f32.mrb[10].mxu1 }
 0x540   :  { %v758_v34 = vadd.f32 %v1064_v33, %v946_v11  ;;  %v752_v35 = vpop.f32.mrb[11].mxu1 }
 0x541   :  { %v753_v36 = vadd.f32 %v946_v11, %v752_v35 }
 0x542   :  { %v764_v38 = vmax.f32 %v758_v34, 0.0 }
 0x543   :  { %v763_v37 = vmax.f32 %v753_v36, 0.0 }
 0x545   :  { %1070 = vmatprep.mubr.msk.f32.mxu0 %vm773_vm2, %v763_v37 }
 0x546   :  { %1071 = vmatmul.mubr.msk.f32.gmra.mrb[10].mxu0 %vm773_vm2, %v764_v38 }
 0x5c7   :  { %v872_v39 = vpop.xlane.xlu0 %871 }
 0x5c8   :  { %v879_v40 = vsub.f32 %v853_v31, %v872_v39 }
 0x5ca   :  { %v883_v41 = vmul.f32 1.442695, %v879_v40 }
 0x5cb   :  { %v874_v43 = vpop.xlane.xlu0 %873 }
 0x5cc   :  { %1112 = vpow2.f32 %v883_v41  ;;  %v880_v44 = vsub.f32 %v858_v32, %v874_v43 }
 0x5ce   :  { %v885_v45 = vmul.f32 1.442695, %v880_v44 }
 0x5d0   :  { %1114 = vpow2.f32 %v885_v45 }
 0x5d6   :  { %v1113_v42 = vpop.eup %1112 }
 0x5d7   :  { %891 = vadd.xlane.f32.xlu0 %v1113_v42 }
 0x5da   :  { %v1115_v50 = vpop.eup %1114 }
 0x619   :  { %v1072_v46 = vpop.f32.mrb[10].mxu0 }
 0x61a   :  { %v862_v47 = vpop.f32.mrb[11].mxu0  ;;  %v868_v49 = vadd.f32 %v1072_v46, %v951_v21 }
 0x61b   :  { %v863_v48 = vadd.f32 %v951_v21, %v862_v47 }
 0x61d   :  { %875 = vmax.xlane.f32.xlu1 %v863_v48 }
 0x621   :  { %877 = vmax.xlane.f32.xlu1 %v868_v49 }
 0x625   :  { %893 = vadd.xlane.f32.xlu1 %v1115_v50 }
 0x664   :  { %v892_v51 = vpop.xlane.xlu0 %891 }
 0x665   :  { %1116 = vrcp.f32 %v892_v51 }
 0x66f   :  { %v1117_v52 = vpop.eup %1116 }
 0x670   :  { %v903_v53 = vmul.f32 %v1117_v52, %v1113_v42 }
 0x672   :  { %907 = vst [vmem:[#allocation3] sm:$0xff] %v903_v53 }
 0x6aa   :  { %v876_v54 = vpop.xlane.xlu1 %875 }
 0x6ab   :  { %v881_v55 = vsub.f32 %v863_v48, %v876_v54 }
 0x6ad   :  { %v887_v56 = vmul.f32 1.442695, %v881_v55 }
 0x6ae   :  { %v878_v57 = vpop.xlane.xlu1 %877 }
 0x6af   :  { %1118 = vpow2.f32 %v887_v56  ;;  %v882_v58 = vsub.f32 %v868_v49, %v878_v57 }
 0x6b1   :  { %v889_v59 = vmul.f32 1.442695, %v882_v58 }
 0x6b2   :  { %v894_v60 = vpop.xlane.xlu1 %893 }
 0x6b3   :  { %1120 = vpow2.f32 %v889_v59 }
 0x6b4   :  { %1122 = vrcp.f32 %v894_v60 }
 0x6b9   :  { %v1119_v61 = vpop.eup %1118 }
 0x6ba   :  { %895 = vadd.xlane.f32.xlu0 %v1119_v61 }
 0x6bd   :  { %v1121_v62 = vpop.eup %1120 }
 0x6be   :  { %v1123_v63 = vpop.eup %1122  ;;  %897 = vadd.xlane.f32.xlu1 %v1121_v62 }
 0x6bf   :  { %v904_v0 = vmul.f32 %v1123_v63, %v1115_v50 }
 0x6c1   :  { %908 = vst [vmem:[#allocation3 + $0x8] sm:$0xff] %v904_v0 }
 0x747   :  { %v896_v1 = vpop.xlane.xlu0 %895 }
 0x748   :  { %1124 = vrcp.f32 %v896_v1 }
 0x74b   :  { %v898_v2 = vpop.xlane.xlu1 %897 }
 0x74c   :  { %1126 = vrcp.f32 %v898_v2 }
 0x752   :  { %v1125_v3 = vpop.eup %1124 }
 0x753   :  { %v905_v4 = vmul.f32 %v1125_v3, %v1119_v61 }
 0x755   :  { %909 = vst [vmem:[#allocation3 + $0x10] sm:$0xff] %v905_v4 }
 0x756   :  { %v1127_v5 = vpop.eup %1126 }
 0x757   :  { %v906_v6 = vmul.f32 %v1127_v5, %v1121_v62 }
 0x759   :  { %910 = vst [vmem:[#allocation3 + $0x18] sm:$0xff] %v906_v6 }
 0x75a   :  { %1139 = shalt.err (!%p1136_p4)
}
 0x75b   :  { %s1140_s16 = scalar_lea.hbm %s1331_s8, 512 }
 0x75c   :  { %p1141_p5 = scmp.ne.s32.totalorder %s1331_s8, %s1140_s16  ;;  %p1144_p6 = scmp.lt.u32.totalorder %s1140_s16, %s1331_s8 }
 0x75e   :  { %p1146_p7 = pnand %p1144_p6, %p1141_p5 }
 0x760   :  { %1149 = shalt.err (!%p1146_p7)
}
 0x761   :  { %s1153_s20 = smov 128   ;;  %s1154_s21 = smov 8  }
 0x762   :  { %922 = dma.vmem_to_hbm [thread:$0]  %s917_s12, 512, %s1331_s8, [#allocation4], %s1153_s20, %s1153_s20, %s1154_s21  }
 0x763   :  { %1150 = dma.done.wait [#allocation4], 512  }
 0x764   :  { %1151 = vsyncadd [#allocation4], 4294966784 }
 0x765   :  { %926 = vsyncpa [#allocation4], 1 }

</bundles_post_ra>
